<compile_context>
chip_gen: v7x
topology: tpu7x:2x2x1
jax: 0.10.0
libtpu: 0.0.40
codegen_flags: <defaults>
</compile_context>

<pallas_src>
import jax
import jax.numpy as jnp
from jax.experimental import pallas as pl
from jax.experimental.pallas import tpu as pltpu


# --------------------------------------------------------------------------- #
# Kernel body
# --------------------------------------------------------------------------- #
def imgnet_rs_kernel(x_ref, w1_ref, b1_ref, w2_ref, b2_ref,
                     feat_ref, hid_ref, code_ref):
    eps = 1e-12

    x = x_ref[...].astype(jnp.float32)

    # L2 normalize (single rsqrt pass; the second F.normalize is a numerical
    # no-op on an already-unit vector for any non-degenerate row).
    sumsq = jnp.sum(x * x, axis=1, keepdims=True)
    inv = jax.lax.rsqrt(jnp.maximum(sumsq, eps * eps))
    feat = x * inv
    feat_ref[...] = feat.astype(feat_ref.dtype)

    # Linear1 (eval BN already folded into w1/b1). bf16 operands, f32 accum.
    h = jnp.dot(feat.astype(jnp.bfloat16), w1_ref[...],
                preferred_element_type=jnp.float32)
    h = jnp.maximum(h + b1_ref[...], 0.0)   # ReLU; Dropout(0.5) identity in eval.

    # Linear2. bf16 operands, f32 accumulation.
    hid = jnp.dot(h.astype(jnp.bfloat16), w2_ref[...],
                  preferred_element_type=jnp.float32)
    hid = hid + b2_ref[...]
    hid_ref[...] = hid.astype(hid_ref.dtype)

    # code = tanh(alpha * hid), alpha == 1.0 -> multiply elided.
    code_ref[...] = jnp.tanh(hid).astype(code_ref.dtype)


# --------------------------------------------------------------------------- #
# Helpers
# --------------------------------------------------------------------------- #
def _round_up(n, m):
    return (n + m - 1) // m * m


def _vmem_capacity_bytes():
    try:
        return int(pltpu.get_tpu_info().vmem_capacity_bytes)
    except Exception:
        return 64 * 1024 * 1024   # conservative default (v7x per-TC VMEM)


def _footprint_bytes(tb, fp, hp, cp, w_bufs, x_bufs):
    """Approximate VMEM residency of one pipelined grid step."""
    weights = w_bufs * (fp * hp * 2 + hp * cp * 2 + hp * 4 + cp * 4)  # bf16 W, f32 b
    x_in = x_bufs * tb * fp * 4
    outs = 2 * (tb * fp * 4 + 2 * tb * cp * 4)   # feat + hid + code, double-buffered
    return weights + x_in + outs


# --------------------------------------------------------------------------- #
# One-time parameter preparation (hoisted out of the hot path)
# --------------------------------------------------------------------------- #
def prepare_imgnet_rs_params(params, *, bn_eps=1e-5):
    """Fold eval-mode BN into Linear1, cast to bf16, zero-pad lane-dense. Cache
    the result and reuse it for every forward call."""
    F, H = params["w1"].shape
    C = params["w2"].shape[1]

    scale = params["gamma"] * jax.lax.rsqrt(params["var"] + bn_eps)      # [1,H]
    w1f = params["w1"] * scale                                           # [F,H]
    b1f = (params["b1"] - params["mean"]) * scale + params["beta"]       # [1,H]

    Fp = _round_up(F, 128)
    # Pad small hidden dims to 256 so Linear1 fills the 256-wide v6e/v7x MXU.
    Hp = _round_up(H, 256) if H <= 256 else _round_up(H, 128)
    Cp = _round_up(C, 128)

    w1p = jnp.zeros((Fp, Hp), jnp.bfloat16).at[:F, :H].set(w1f.astype(jnp.bfloat16))
    b1p = jnp.zeros((1, Hp), jnp.float32).at[:, :H].set(b1f)
    w2p = jnp.zeros((Hp, Cp), jnp.bfloat16).at[:H, :C].set(
        params["w2"].astype(jnp.bfloat16))
    b2p = jnp.zeros((1, Cp), jnp.float32).at[:, :C].set(params["b2"])

    return dict(w1p=w1p, b1p=b1p, w2p=w2p, b2p=b2p, dims=(F, H, C))


# --------------------------------------------------------------------------- #
# pallas_call wrapper
# --------------------------------------------------------------------------- #
def _pallas_forward(xp, w1p, b1p, w2p, b2p, tb, weight_buffers, x_buffers):
    Bp, Fp = xp.shape
    Hp = w1p.shape[1]
    Cp = w2p.shape[1]
    grid = (Bp // tb,)

    def spec(shape, index_map, bufs):
        if bufs is None:
            return pl.BlockSpec(shape, index_map)
        return pl.BlockSpec(shape, index_map, pipeline_mode=pl.Buffered(bufs))

    footprint = _footprint_bytes(
        tb, Fp, Hp, Cp,
        2 if weight_buffers is None else weight_buffers,
        2 if x_buffers is None else x_buffers)
    vmem_limit = int(min(max(footprint + 8 * 1024 * 1024, 32 * 1024 * 1024),
                         96 * 1024 * 1024))

    return pl.pallas_call(
        imgnet_rs_kernel,
        out_shape=(
            jax.ShapeDtypeStruct((Bp, Fp), jnp.float32),   # feat
            jax.ShapeDtypeStruct((Bp, Cp), jnp.float32),   # hid
            jax.ShapeDtypeStruct((Bp, Cp), jnp.float32),   # code
        ),
        grid=grid,
        in_specs=[
            spec((tb, Fp), lambda i: (i, 0), x_buffers),        # x tile
            spec((Fp, Hp), lambda i: (0, 0), weight_buffers),   # w1 (resident)
            spec((1, Hp), lambda i: (0, 0), weight_buffers),    # b1 (resident)
            spec((Hp, Cp), lambda i: (0, 0), weight_buffers),   # w2 (resident)
            spec((1, Cp), lambda i: (0, 0), weight_buffers),    # b2 (resident)
        ],
        out_specs=(
            pl.BlockSpec((tb, Fp), lambda i: (i, 0)),           # feat tile
            pl.BlockSpec((tb, Cp), lambda i: (i, 0)),           # hid tile
            pl.BlockSpec((tb, Cp), lambda i: (i, 0)),           # code tile
        ),
        compiler_params=pltpu.CompilerParams(
            dimension_semantics=("parallel",),
            vmem_limit_bytes=vmem_limit,
        ),
    )(xp, w1p, b1p, w2p, b2p)


def imgnet_rs_forward(x, prepared, *, batch_tile=None):
    """x: [B, img_feat_len] float32. prepared: prepare_imgnet_rs_params(...)."""
    x = x.astype(jnp.float32)
    B, F = x.shape
    F0, _, C = prepared["dims"]
    assert F == F0, "img_feat_len mismatch with prepared params"
    Fp, Hp = prepared["w1p"].shape
    Cp = prepared["w2p"].shape[1]

    # ---- Batch tile sizing: fat tiles when VMEM allows, shrunk to fit the
    # chip (v7x has only 64 MiB per TensorCore). ----
    vmem_cap = _vmem_capacity_bytes()
    budget = int(vmem_cap * 0.85)
    TB = 1024 if batch_tile is None else batch_tile
    TB = min(TB, _round_up(B, 8))
    while TB > 64 and _footprint_bytes(TB, Fp, Hp, Cp, 1, 3) > budget:
        TB = max(64, TB // 2)
    # Split large batches into >= 2 grid steps so the "parallel" batch axis can
    # shard across v7x's two TensorCores.
    if B >= 256 and pl.cdiv(B, TB) < 2:
        TB = _round_up(pl.cdiv(B, 2), 8)
    Bp = _round_up(B, TB)

    # ---- Only materialize a padded copy of x when actually needed. ----
    if Bp == B and Fp == F:
        xp = x
    else:
        xp = jnp.zeros((Bp, Fp), jnp.float32).at[:B, :F].set(x)

    grid_len = Bp // TB
    # Deepen the x pipeline when it is the only recurring per-step DMA and
    # there are enough steps to overlap.
    x_depth = 3 if grid_len >= 3 else None

    # Attempt 1: single-buffered resident weights (+ deep x pipeline).
    # Attempt 2: default buffering, if this Pallas build rejects pipeline_mode.
    attempts = ((1, x_depth), (None, None))
    err = None
    for wb, xb in attempts:
        try:
            feat, hid, code = _pallas_forward(
                xp, prepared["w1p"], prepared["b1p"],
                prepared["w2p"], prepared["b2p"], TB, wb, xb)
            err = None
            break
        except Exception as e:   # pipeline_mode unsupported -> fall back
            err = e
    if err is not None:
        raise err

    feat_out = feat if (Bp == B and Fp == F) else feat[:B, :F]
    hid_out = hid if (Bp == B and Cp == C) else hid[:B, :C]
    code_out = code if (Bp == B and Cp == C) else code[:B, :C]
    return feat_out, hid_out, code_out


# --------------------------------------------------------------------------- #
# Parameter init + pure-JAX reference (PyTorch eval-mode semantics)
# --------------------------------------------------------------------------- #
def init_params(key, img_feat_len, hidden_len, code_len):
    k1, k2, k3, k4, kg, kb, km, kv = jax.random.split(key, 8)
    # Linear weights stored pre-transposed as [in, out] for x @ W.
    w1 = 0.1 * jax.random.normal(k1, (img_feat_len, hidden_len), jnp.float32)
    b1 = 0.1 * jax.random.normal(k2, (1, hidden_len), jnp.float32)
    w2 = 0.1 * jax.random.normal(k3, (hidden_len, code_len), jnp.float32)
    b2 = 0.1 * jax.random.normal(k4, (1, code_len), jnp.float32)
    gamma = 1.0 + 0.1 * jax.random.normal(kg, (1, hidden_len), jnp.float32)
    beta = 0.1 * jax.random.normal(kb, (1, hidden_len), jnp.float32)
    mean = 0.1 * jax.random.normal(km, (1, hidden_len), jnp.float32)
    var = jnp.abs(1.0 + 0.1 * jax.random.normal(kv, (1, hidden_len), jnp.float32))
    return dict(w1=w1, b1=b1, w2=w2, b2=b2,
                gamma=gamma, beta=beta, mean=mean, var=var)


def reference_forward(x, p):
    """Faithful f32 reference of the PyTorch module (eval mode)."""
    eps = 1e-12
    n1 = jnp.sqrt(jnp.sum(x * x, axis=1, keepdims=True))
    x = x / jnp.maximum(n1, eps)
    n2 = jnp.sqrt(jnp.sum(x * x, axis=1, keepdims=True))
    feat = x / jnp.maximum(n2, eps)
    h = feat @ p["w1"] + p["b1"]
    h = (h - p["mean"]) * jax.lax.rsqrt(p["var"] + 1e-5) * p["gamma"] + p["beta"]
    h = jnp.maximum(h, 0.0)
    hid = h @ p["w2"] + p["b2"]
    code = jnp.tanh(hid)
    return feat, hid, code


if __name__ == "__main__":
    B, IMG_FEAT, HIDDEN, CODE = 8, 32, 32, 16

    key = jax.random.PRNGKey(0)
    kx, kp = jax.random.split(key)
    x = jax.random.normal(kx, (B, IMG_FEAT), jnp.float32)
    params = init_params(kp, IMG_FEAT, HIDDEN, CODE)

    prepared = prepare_imgnet_rs_params(params)   # one-time weight prep (cached)
    feat, hid, code = jax.block_until_ready(imgnet_rs_forward(x, prepared))

    feat_r, hid_r, code_r = reference_forward(x, params)
    # feat path is pure f32 -> tight tolerance; hid/code use bf16 MXU operands
    # with f32 accumulation -> bf16-level tolerance.
    assert jnp.allclose(feat, feat_r, atol=1e-5, rtol=1e-5)
    assert jnp.allclose(hid, hid_r, atol=2e-2, rtol=2e-2)
    assert jnp.allclose(code, code_r, atol=2e-2, rtol=2e-2)

    print("KERNEL_OK")
</pallas_src>

<mosaic_0001>
module attributes {stable_mosaic.version = 11 : i64} {
  func.func @imgnet_rs_kernel(%arg0: i32, %arg1: memref<8x128xf32, #tpu.memory_space<vmem>>, %arg2: memref<128x256xbf16, #tpu.memory_space<vmem>>, %arg3: memref<1x256xf32, #tpu.memory_space<vmem>>, %arg4: memref<256x128xbf16, #tpu.memory_space<vmem>>, %arg5: memref<1x128xf32, #tpu.memory_space<vmem>>, %arg6: memref<8x128xf32, #tpu.memory_space<vmem>>, %arg7: memref<8x128xf32, #tpu.memory_space<vmem>>, %arg8: memref<8x128xf32, #tpu.memory_space<vmem>>) attributes {dimension_semantics = [#tpu.dimension_semantics<parallel>], iteration_bounds = array<i64: 1>, scalar_prefetch = 0 : i64, scratch_operands = 0 : i64, tpu.core_type = #tpu.core_type<tc>, window_params = [{transform_indices = @transform_0, window_bounds = array<i64: 8, 128>}, {pipeline_mode = #tpu.pipeline_mode<synchronous>, transform_indices = @transform_1, window_bounds = array<i64: 128, 256>}, {pipeline_mode = #tpu.pipeline_mode<synchronous>, transform_indices = @transform_2, window_bounds = array<i64: 1, 256>}, {pipeline_mode = #tpu.pipeline_mode<synchronous>, transform_indices = @transform_3, window_bounds = array<i64: 256, 128>}, {pipeline_mode = #tpu.pipeline_mode<synchronous>, transform_indices = @transform_4, window_bounds = array<i64: 1, 128>}, {transform_indices = @transform_5, window_bounds = array<i64: 8, 128>}, {transform_indices = @transform_6, window_bounds = array<i64: 8, 128>}, {transform_indices = @transform_7, window_bounds = array<i64: 8, 128>}]} {
    %c0 = arith.constant 0 : index
    %c0_0 = arith.constant 0 : index
    %0 = vector.load %arg1[%c0, %c0_0] : memref<8x128xf32, #tpu.memory_space<vmem>>, vector<8x128xf32>
    %1 = arith.mulf %0, %0 : vector<8x128xf32>
    %cst = arith.constant dense<0.000000e+00> : vector<8xf32>
    %2 = vector.multi_reduction <add>, %1, %cst [1] : vector<8x128xf32> to vector<8xf32>
    %3 = vector.shape_cast %2 : vector<8xf32> to vector<8x1xf32>
    %cst_1 = arith.constant 1.000000e-24 : f32
    %4 = vector.broadcast %cst_1 : f32 to vector<8x1xf32>
    %5 = arith.maximumf %3, %4 : vector<8x1xf32>
    %6 = math.rsqrt %5 : vector<8x1xf32>
    %7 = vector.broadcast %6 : vector<8x1xf32> to vector<8x128xf32>
    %8 = arith.mulf %0, %7 : vector<8x128xf32>
    %c0_2 = arith.constant 0 : index
    %c0_3 = arith.constant 0 : index
    %9 = vector.load %arg6[%c0_2, %c0_3] : memref<8x128xf32, #tpu.memory_space<vmem>>, vector<8x128xf32>
    tpu.vector_store %arg6[%c0_2, %c0_3], %8 {strides = array<i32>} : memref<8x128xf32, #tpu.memory_space<vmem>>, vector<8x128xf32>,
    %10 = arith.truncf %8 : vector<8x128xf32> to vector<8x128xbf16>
    %c0_4 = arith.constant 0 : index
    %c0_5 = arith.constant 0 : index
    %11 = vector.load %arg2[%c0_4, %c0_5] : memref<128x256xbf16, #tpu.memory_space<vmem>>, vector<128x256xbf16>
    %cst_6 = arith.constant dense<0.000000e+00> : vector<8x256xf32>
    %12 = tpu.matmul %10, %11, %cst_6 {dimension_numbers = #tpu.dot_dimension_numbers<[1], [0], [0], [1], [0, 0, 1, 1], [], []>} : vector<8x128xbf16>, vector<128x256xbf16>, vector<8x256xf32> -> vector<8x256xf32>
    %c0_7 = arith.constant 0 : index
    %c0_8 = arith.constant 0 : index
    %13 = vector.load %arg3[%c0_7, %c0_8] : memref<1x256xf32, #tpu.memory_space<vmem>>, vector<1x256xf32>
    %14 = vector.broadcast %13 : vector<1x256xf32> to vector<8x256xf32>
    %15 = arith.addf %12, %14 : vector<8x256xf32>
    %cst_9 = arith.constant 0.000000e+00 : f32
    %16 = vector.broadcast %cst_9 : f32 to vector<8x256xf32>
    %17 = arith.maximumf %15, %16 : vector<8x256xf32>
    %18 = arith.truncf %17 : vector<8x256xf32> to vector<8x256xbf16>
    %c0_10 = arith.constant 0 : index
    %c0_11 = arith.constant 0 : index
    %19 = vector.load %arg4[%c0_10, %c0_11] : memref<256x128xbf16, #tpu.memory_space<vmem>>, vector<256x128xbf16>
    %cst_12 = arith.constant dense<0.000000e+00> : vector<8x128xf32>
    %20 = tpu.matmul %18, %19, %cst_12 {dimension_numbers = #tpu.dot_dimension_numbers<[1], [0], [0], [1], [0, 0, 1, 1], [], []>} : vector<8x256xbf16>, vector<256x128xbf16>, vector<8x128xf32> -> vector<8x128xf32>
    %c0_13 = arith.constant 0 : index
    %c0_14 = arith.constant 0 : index
    %21 = vector.load %arg5[%c0_13, %c0_14] : memref<1x128xf32, #tpu.memory_space<vmem>>, vector<1x128xf32>
    %22 = vector.broadcast %21 : vector<1x128xf32> to vector<8x128xf32>
    %23 = arith.addf %20, %22 : vector<8x128xf32>
    %c0_15 = arith.constant 0 : index
    %c0_16 = arith.constant 0 : index
    %24 = vector.load %arg7[%c0_15, %c0_16] : memref<8x128xf32, #tpu.memory_space<vmem>>, vector<8x128xf32>
    tpu.vector_store %arg7[%c0_15, %c0_16], %23 {strides = array<i32>} : memref<8x128xf32, #tpu.memory_space<vmem>>, vector<8x128xf32>,
    %25 = math.tanh %23 : vector<8x128xf32>
    %c0_17 = arith.constant 0 : index
    %c0_18 = arith.constant 0 : index
    %26 = vector.load %arg8[%c0_17, %c0_18] : memref<8x128xf32, #tpu.memory_space<vmem>>, vector<8x128xf32>
    tpu.vector_store %arg8[%c0_17, %c0_18], %25 {strides = array<i32>} : memref<8x128xf32, #tpu.memory_space<vmem>>, vector<8x128xf32>,
    return
  }
  func.func @transform_0(%arg0: i32) -> (i32, i32) {
    %c0_i32 = arith.constant 0 : i32
    %c0_i32_0 = arith.constant 0 : i32
    return %arg0, %c0_i32 : i32, i32
  }
  func.func @transform_1(%arg0: i32) -> (i32, i32) {
    %c0_i32 = arith.constant 0 : i32
    %c0_i32_0 = arith.constant 0 : i32
    %c0_i32_1 = arith.constant 0 : i32
    return %c0_i32, %c0_i32_0 : i32, i32
  }
  func.func @transform_2(%arg0: i32) -> (i32, i32) {
    %c0_i32 = arith.constant 0 : i32
    %c0_i32_0 = arith.constant 0 : i32
    %c0_i32_1 = arith.constant 0 : i32
    return %c0_i32, %c0_i32_0 : i32, i32
  }
  func.func @transform_3(%arg0: i32) -> (i32, i32) {
    %c0_i32 = arith.constant 0 : i32
    %c0_i32_0 = arith.constant 0 : i32
    %c0_i32_1 = arith.constant 0 : i32
    return %c0_i32, %c0_i32_0 : i32, i32
  }
  func.func @transform_4(%arg0: i32) -> (i32, i32) {
    %c0_i32 = arith.constant 0 : i32
    %c0_i32_0 = arith.constant 0 : i32
    %c0_i32_1 = arith.constant 0 : i32
    return %c0_i32, %c0_i32_0 : i32, i32
  }
  func.func @transform_5(%arg0: i32) -> (i32, i32) {
    %c0_i32 = arith.constant 0 : i32
    %c0_i32_0 = arith.constant 0 : i32
    return %arg0, %c0_i32 : i32, i32
  }
  func.func @transform_6(%arg0: i32) -> (i32, i32) {
    %c0_i32 = arith.constant 0 : i32
    %c0_i32_0 = arith.constant 0 : i32
    return %arg0, %c0_i32 : i32, i32
  }
  func.func @transform_7(%arg0: i32) -> (i32, i32) {
    %c0_i32 = arith.constant 0 : i32
    %c0_i32_0 = arith.constant 0 : i32
    return %arg0, %c0_i32 : i32, i32
  }
}

module attributes {stable_mosaic.version = 11 : i64} {
  func.func @imgnet_rs_kernel(%arg0: i32, %arg1: memref<8x128xf32, #tpu.memory_space<vmem>>, %arg2: memref<128x256xbf16, #tpu.memory_space<vmem>>, %arg3: memref<1x256xf32, #tpu.memory_space<vmem>>, %arg4: memref<256x128xbf16, #tpu.memory_space<vmem>>, %arg5: memref<1x128xf32, #tpu.memory_space<vmem>>, %arg6: memref<8x128xf32, #tpu.memory_space<vmem>>, %arg7: memref<8x128xf32, #tpu.memory_space<vmem>>, %arg8: memref<8x128xf32, #tpu.memory_space<vmem>>) attributes {dimension_semantics = [#tpu.dimension_semantics<parallel>], iteration_bounds = array<i64: 1>, scalar_prefetch = 0 : i64, scratch_operands = 0 : i64, tpu.core_type = #tpu.core_type<tc>, window_params = [{transform_indices = @transform_0, window_bounds = array<i64: 8, 128>}, {pipeline_mode = #tpu.pipeline_mode<synchronous>, transform_indices = @transform_1, window_bounds = array<i64: 128, 256>}, {pipeline_mode = #tpu.pipeline_mode<synchronous>, transform_indices = @transform_2, window_bounds = array<i64: 1, 256>}, {pipeline_mode = #tpu.pipeline_mode<synchronous>, transform_indices = @transform_3, window_bounds = array<i64: 256, 128>}, {pipeline_mode = #tpu.pipeline_mode<synchronous>, transform_indices = @transform_4, window_bounds = array<i64: 1, 128>}, {transform_indices = @transform_5, window_bounds = array<i64: 8, 128>}, {transform_indices = @transform_6, window_bounds = array<i64: 8, 128>}, {transform_indices = @transform_7, window_bounds = array<i64: 8, 128>}]} {
    %c0 = arith.constant 0 : index
    %c0_0 = arith.constant 0 : index
    %0 = vector.load %arg1[%c0, %c0_0] : memref<8x128xf32, #tpu.memory_space<vmem>>, vector<8x128xf32>
    %1 = arith.mulf %0, %0 : vector<8x128xf32>
    %cst = arith.constant dense<0.000000e+00> : vector<8xf32>
    %2 = vector.multi_reduction <add>, %1, %cst [1] : vector<8x128xf32> to vector<8xf32>
    %3 = vector.shape_cast %2 : vector<8xf32> to vector<8x1xf32>
    %cst_1 = arith.constant 1.000000e-24 : f32
    %4 = vector.broadcast %cst_1 : f32 to vector<8x1xf32>
    %5 = arith.maximumf %3, %4 : vector<8x1xf32>
    %6 = math.rsqrt %5 : vector<8x1xf32>
    %7 = vector.broadcast %6 : vector<8x1xf32> to vector<8x128xf32>
    %8 = arith.mulf %0, %7 : vector<8x128xf32>
    %c0_2 = arith.constant 0 : index
    %c0_3 = arith.constant 0 : index
    %9 = vector.load %arg6[%c0_2, %c0_3] : memref<8x128xf32, #tpu.memory_space<vmem>>, vector<8x128xf32>
    tpu.vector_store %arg6[%c0_2, %c0_3], %8 {strides = array<i32>} : memref<8x128xf32, #tpu.memory_space<vmem>>, vector<8x128xf32>,
    %10 = arith.truncf %8 : vector<8x128xf32> to vector<8x128xbf16>
    %c0_4 = arith.constant 0 : index
    %c0_5 = arith.constant 0 : index
    %11 = vector.load %arg2[%c0_4, %c0_5] : memref<128x256xbf16, #tpu.memory_space<vmem>>, vector<128x256xbf16>
    %cst_6 = arith.constant dense<0.000000e+00> : vector<8x256xf32>
    %12 = tpu.matmul %10, %11, %cst_6 {dimension_numbers = #tpu.dot_dimension_numbers<[1], [0], [0], [1], [0, 0, 1, 1], [], []>} : vector<8x128xbf16>, vector<128x256xbf16>, vector<8x256xf32> -> vector<8x256xf32>
    %c0_7 = arith.constant 0 : index
    %c0_8 = arith.constant 0 : index
    %13 = vector.load %arg3[%c0_7, %c0_8] : memref<1x256xf32, #tpu.memory_space<vmem>>, vector<1x256xf32>
    %14 = vector.broadcast %13 : vector<1x256xf32> to vector<8x256xf32>
    %15 = arith.addf %12, %14 : vector<8x256xf32>
    %cst_9 = arith.constant 0.000000e+00 : f32
    %16 = vector.broadcast %cst_9 : f32 to vector<8x256xf32>
    %17 = arith.maximumf %15, %16 : vector<8x256xf32>
    %18 = arith.truncf %17 : vector<8x256xf32> to vector<8x256xbf16>
    %c0_10 = arith.constant 0 : index
    %c0_11 = arith.constant 0 : index
    %19 = vector.load %arg4[%c0_10, %c0_11] : memref<256x128xbf16, #tpu.memory_space<vmem>>, vector<256x128xbf16>
    %cst_12 = arith.constant dense<0.000000e+00> : vector<8x128xf32>
    %20 = tpu.matmul %18, %19, %cst_12 {dimension_numbers = #tpu.dot_dimension_numbers<[1], [0], [0], [1], [0, 0, 1, 1], [], []>} : vector<8x256xbf16>, vector<256x128xbf16>, vector<8x128xf32> -> vector<8x128xf32>
    %c0_13 = arith.constant 0 : index
    %c0_14 = arith.constant 0 : index
    %21 = vector.load %arg5[%c0_13, %c0_14] : memref<1x128xf32, #tpu.memory_space<vmem>>, vector<1x128xf32>
    %22 = vector.broadcast %21 : vector<1x128xf32> to vector<8x128xf32>
    %23 = arith.addf %20, %22 : vector<8x128xf32>
    %c0_15 = arith.constant 0 : index
    %c0_16 = arith.constant 0 : index
    %24 = vector.load %arg7[%c0_15, %c0_16] : memref<8x128xf32, #tpu.memory_space<vmem>>, vector<8x128xf32>
    tpu.vector_store %arg7[%c0_15, %c0_16], %23 {strides = array<i32>} : memref<8x128xf32, #tpu.memory_space<vmem>>, vector<8x128xf32>,
    %25 = math.tanh %23 : vector<8x128xf32>
    %c0_17 = arith.constant 0 : index
    %c0_18 = arith.constant 0 : index
    %26 = vector.load %arg8[%c0_17, %c0_18] : memref<8x128xf32, #tpu.memory_space<vmem>>, vector<8x128xf32>
    tpu.vector_store %arg8[%c0_17, %c0_18], %25 {strides = array<i32>} : memref<8x128xf32, #tpu.memory_space<vmem>>, vector<8x128xf32>,
    return
  }
  func.func @transform_0(%arg0: i32) -> (i32, i32) {
    %c0_i32 = arith.constant 0 : i32
    %c0_i32_0 = arith.constant 0 : i32
    return %arg0, %c0_i32 : i32, i32
  }
  func.func @transform_1(%arg0: i32) -> (i32, i32) {
    %c0_i32 = arith.constant 0 : i32
    %c0_i32_0 = arith.constant 0 : i32
    %c0_i32_1 = arith.constant 0 : i32
    return %c0_i32, %c0_i32_0 : i32, i32
  }
  func.func @transform_2(%arg0: i32) -> (i32, i32) {
    %c0_i32 = arith.constant 0 : i32
    %c0_i32_0 = arith.constant 0 : i32
    %c0_i32_1 = arith.constant 0 : i32
    return %c0_i32, %c0_i32_0 : i32, i32
  }
  func.func @transform_3(%arg0: i32) -> (i32, i32) {
    %c0_i32 = arith.constant 0 : i32
    %c0_i32_0 = arith.constant 0 : i32
    %c0_i32_1 = arith.constant 0 : i32
    return %c0_i32, %c0_i32_0 : i32, i32
  }
  func.func @transform_4(%arg0: i32) -> (i32, i32) {
    %c0_i32 = arith.constant 0 : i32
    %c0_i32_0 = arith.constant 0 : i32
    %c0_i32_1 = arith.constant 0 : i32
    return %c0_i32, %c0_i32_0 : i32, i32
  }
  func.func @transform_5(%arg0: i32) -> (i32, i32) {
    %c0_i32 = arith.constant 0 : i32
    %c0_i32_0 = arith.constant 0 : i32
    return %arg0, %c0_i32 : i32, i32
  }
  func.func @transform_6(%arg0: i32) -> (i32, i32) {
    %c0_i32 = arith.constant 0 : i32
    %c0_i32_0 = arith.constant 0 : i32
    return %arg0, %c0_i32 : i32, i32
  }
  func.func @transform_7(%arg0: i32) -> (i32, i32) {
    %c0_i32 = arith.constant 0 : i32
    %c0_i32_0 = arith.constant 0 : i32
    return %arg0, %c0_i32 : i32, i32
  }
}

</mosaic_0001>

<bundles_post_ra>
// kernel: tpu_custom_call.1
= control target key start
LH: loop header
LB: loop body
LE: loop exit
PB: predicated region body
PF: predicated region fallthrough
CT: control target
= control target key end

     0   :  { %13 = vsyncpa [#allocation3], 0  ;;  %s832_s0 = inlined_call_operand.hbm [shape: f32[8,128], index: 0, kind: input, shape index: {}]   ;;  %s833_s1 = inlined_call_operand.hbm [shape: bf16[128,256], index: 1, kind: input, shape index: {}]   ;;  %s834_s2 = inlined_call_operand.vmem [shape: f32[1,256], index: 2, kind: input, shape index: {}]   ;;  %s835_s3 = inlined_call_operand.hbm [shape: bf16[256,128], index: 3, kind: input, shape index: {}]   ;;  %s836_s4 = inlined_call_operand.vmem [shape: f32[1,128], index: 4, kind: input, shape index: {}]   ;;  %s837_s5 = inlined_call_operand.hbm [shape: f32[8,128], index: 5, kind: output, shape index: {0}]   ;;  %s838_s6 = inlined_call_operand.hbm [shape: f32[8,128], index: 6, kind: output, shape index: {1}]   ;;  %s839_s7 = inlined_call_operand.hbm [shape: f32[8,128], index: 7, kind: output, shape index: {2}]  }
   0x1   :  { %14 = vsyncpa [#allocation6], 0 }
   0x2   :  { %15 = vsyncpa [#allocation4], 0 }
   0x3   :  { %16 = vsyncpa [#allocation10], 0  ;;  %s698_s24 = smov [#allocation5]   ;;  %s558_s28 = scalar_lea.hbm %s833_s1, 2048 }
   0x4   :  { %s32_s25 = sshll.u32 %s698_s24, 4  ;;  %p559_p0 = scmp.ne.s32.totalorder %s833_s1, %s558_s28  ;;  %s33_s25 = int_to_ptr.vmem [resolvable:$true] %s32_s25 }
   0x5   :  { %p562_p1 = scmp.lt.u32.totalorder %s558_s28, %s833_s1 }
   0x7   :  { %p564_p2 = pnand %p562_p1, %p559_p0 }
   0x9   :  { %567 = shalt.err (!%p564_p2)
}
   0xa   :  { %s568_s10 = scalar_lea.vmem %s33_s25, 2048  ;;  %p573_p4 = scmp.lt.s32.totalorder %s33_s25, %s33_s25 }
   0xb   :  { %p569_p3 = scmp.ne.s32.totalorder %s33_s25, %s568_s10  ;;  %p574_p5 = scmp.lt.s32.totalorder %s568_s10, %s568_s10 }
   0xd   :  { %p575_p6 = por %p574_p5, %p573_p4 }
   0xf   :  { %p576_p7 = pnand %p575_p6, %p569_p3 }
  0x11   :  { %579 = shalt.err (!%p576_p7)
}
  0x12   :  { %s699_s11 = smov 128   ;;  %s700_s12 = smov 8  }
  0x13   :  { %38 = dma.hbm_to_vmem [thread:$0]  %s833_s1, 2048, %s33_s25, [#allocation6], %s699_s11, %s699_s11, %s700_s12  }
  0x14   :  { %s701_s15 = smov [#allocation2]   ;;  %s702_s17 = smov [#allocation7]  }
  0x15   :  { %s23_s16 = sshll.u32 %s701_s15, 4  ;;  %s46_s18 = sshll.u32 %s702_s17, 4  ;;  %s24_s16 = int_to_ptr.vmem [resolvable:$true] %s23_s16  ;;  %s47_s18 = int_to_ptr.vmem [resolvable:$true] %s46_s18 }
  0x16   :  { %s580_s21 = scalar_lea.hbm %s832_s0, 128 }
  0x17   :  { %p581_p8 = scmp.ne.s32.totalorder %s832_s0, %s580_s21  ;;  %p584_p9 = scmp.lt.u32.totalorder %s580_s21, %s832_s0 }
  0x19   :  { %p586_p10 = pnand %p584_p9, %p581_p8 }
  0x1b   :  { %589 = shalt.err (!%p586_p10)
}
  0x1c   :  { %s590_s1 = scalar_lea.vmem %s24_s16, 128  ;;  %p595_p12 = scmp.lt.s32.totalorder %s24_s16, %s24_s16 }
  0x1d   :  { %p591_p11 = scmp.ne.s32.totalorder %s24_s16, %s590_s1  ;;  %p596_p13 = scmp.lt.s32.totalorder %s590_s1, %s590_s1 }
  0x1f   :  { %p597_p0 = por %p596_p13, %p595_p12 }
  0x21   :  { %p598_p1 = pnand %p597_p0, %p591_p11 }
  0x23   :  { %601 = shalt.err (!%p598_p1)
}
  0x24   :  { %26 = dma.hbm_to_vmem [thread:$0]  %s832_s0, 128, %s24_s16, [#allocation3]  }
  0x25   :  { %s602_s30 = scalar_lea.hbm %s835_s3, 2048 }
  0x26   :  { %p603_p2 = scmp.ne.s32.totalorder %s835_s3, %s602_s30  ;;  %p606_p3 = scmp.lt.u32.totalorder %s602_s30, %s835_s3 }
  0x28   :  { %p608_p4 = pnand %p606_p3, %p603_p2 }
  0x2a   :  { %611 = shalt.err (!%p608_p4)
}
  0x2b   :  { %s612_s12 = scalar_lea.vmem %s47_s18, 2048  ;;  %p617_p6 = scmp.lt.s32.totalorder %s47_s18, %s47_s18 }
  0x2c   :  { %p613_p5 = scmp.ne.s32.totalorder %s47_s18, %s612_s12  ;;  %p618_p7 = scmp.lt.s32.totalorder %s612_s12, %s612_s12 }
  0x2e   :  { %p619_p8 = por %p618_p7, %p617_p6 }
  0x30   :  { %p620_p9 = pnand %p619_p8, %p613_p5 }
  0x32   :  { %623 = shalt.err (!%p620_p9)
}
  0x33   :  { %s703_s0 = smov 64   ;;  %s704_s13 = smov 4  }
  0x34   :  { %52 = dma.hbm_to_vmem [thread:$0]  %s835_s3, 2048, %s47_s18, [#allocation6], %s703_s0, %s703_s0, %s704_s13  }
  0x35   :  { %690 = dma.done.wait [#allocation3], 128  }
  0x36   :  { %691 = vsyncadd [#allocation3], 4294967168 }
  0x37   :  { %692 = dma.done.wait [#allocation6], 4096  }
  0x38   :  { %693 = vsyncadd [#allocation6], 4294963200  ;;  %v785_v0 = vld [vmem:[#allocation2] sm:$0xff]  ;;  %v514_v2 = vld [vmem:[#allocation5 + $0x4] ss:$8 sps:$4 sm:$0xff]   ;;  %v705_v15 = vmov 0   ;;  %v92_v40 = vlaneseq }
  0x39   :  { %v66_v1 = vmul.f32 %v785_v0, %v785_v0  ;;  %v516_v3 = vld [vmem:[#allocation5] ss:$8 sps:$4 sm:$0xff]   ;;  %v517_v4 = vld [vmem:[#allocation5 + $0x14] ss:$8 sps:$4 sm:$0xff]   ;;  %182 = vmatprep.subr.bf16.mxu0 %v514_v2  ;;  %v519_v5 = vld [vmem:[#allocation5 + $0x10] ss:$8 sps:$4 sm:$0xff]   ;;  %214 = vmatprep.mubr.bf16.mxu0 %v705_v15 }
  0x3a   :  { %183 = vmatpush1.bf16.msra.mxu0 %v516_v3  ;;  %v520_v6 = vld [vmem:[#allocation5 + $0x24] ss:$8 sps:$4 sm:$0xff]   ;;  %v522_v7 = vld [vmem:[#allocation5 + $0x20] ss:$8 sps:$4 sm:$0xff]   ;;  %v523_v8 = vld [vmem:[#allocation5 + $0x34] ss:$8 sps:$4 sm:$0xff]  }
  0x3b   :  { %67 = vadd.xlane.f32.xlu0 %v66_v1  ;;  %184 = vmatprep.subr.bf16.mxu0 %v517_v4  ;;  %v525_v9 = vld [vmem:[#allocation5 + $0x30] ss:$8 sps:$4 sm:$0xff]   ;;  %v526_v10 = vld [vmem:[#allocation5 + $0x44] ss:$8 sps:$4 sm:$0xff]   ;;  %v528_v11 = vld [vmem:[#allocation5 + $0x40] ss:$8 sps:$4 sm:$0xff]  }
  0x3c   :  { %v529_v12 = vld [vmem:[#allocation5 + $0x54] ss:$8 sps:$4 sm:$0xff]   ;;  %v531_v13 = vld [vmem:[#allocation5 + $0x50] ss:$8 sps:$4 sm:$0xff]   ;;  %v532_v14 = vld [vmem:[#allocation5 + $0x64] ss:$8 sps:$4 sm:$0xff]  }
  0x3d   :  { %v534_v16 = vld [vmem:[#allocation5 + $0x60] ss:$8 sps:$4 sm:$0xff]   ;;  %v535_v17 = vld [vmem:[#allocation5 + $0x74] ss:$8 sps:$4 sm:$0xff]   ;;  %v537_v18 = vld [vmem:[#allocation5 + $0x70] ss:$8 sps:$4 sm:$0xff]  }
  0x3e   :  { %185 = vmatpush1.bf16.msra.mxu0 %v519_v5  ;;  %v538_v19 = vld [vmem:[#allocation7 + $0x40] sm:$0xff]   ;;  %v540_v21 = vld [vmem:[#allocation7 + $0x48] sm:$0xff]   ;;  %v542_v23 = vld [vmem:[#allocation7 + $0x50] sm:$0xff]   ;;  %v93_v41 = vshrl.u32 %v92_v40, 7  ;;  %s706_s17 = smov [#allocation8]  }
  0x3f   :  { %186 = vmatprep.subr.bf16.mxu0 %v520_v6  ;;  %v539_v20 = vld [vmem:[#allocation7] sm:$0xff]   ;;  %481 = vmatprep.subr.bf16.mxu1 %v538_v19  ;;  %v541_v22 = vld [vmem:[#allocation7 + $0x8] sm:$0xff]   ;;  %v543_v24 = vld [vmem:[#allocation7 + $0x10] sm:$0xff]   ;;  %s411_s18 = sshll.u32 %s706_s17, 4  ;;  %s412_s18 = int_to_ptr.vmem [resolvable:$true] %s411_s18 }
  0x40   :  { %482 = vmatpush3.bf16.msra.mxu1 %v539_v20  ;;  %v544_v25 = vld [vmem:[#allocation7 + $0x58] sm:$0xff]   ;;  %v546_v27 = vld [vmem:[#allocation7 + $0x60] sm:$0xff]   ;;  %v548_v29 = vld [vmem:[#allocation7 + $0x68] sm:$0xff]   ;;  %v94_v42 = vsub.s32 0, %v93_v41  ;;  %v98_v44 = vsub.s32 1, %v93_v41  ;;  %s624_s19 = scalar_lea.vmem %s412_s18, 128  ;;  %p629_p11 = scmp.lt.s32.totalorder %s412_s18, %s412_s18 }
  0x41   :  { %483 = vmatprep.subr.bf16.mxu1 %v540_v21  ;;  %v545_v26 = vld [vmem:[#allocation7 + $0x18] sm:$0xff]   ;;  %v547_v28 = vld [vmem:[#allocation7 + $0x20] sm:$0xff]   ;;  %v549_v30 = vld [vmem:[#allocation7 + $0x28] sm:$0xff]   ;;  %p625_p10 = scmp.ne.s32.totalorder %s412_s18, %s624_s19  ;;  %p630_p12 = scmp.lt.s32.totalorder %s624_s19, %s624_s19 }
  0x42   :  { %187 = vmatpush1.bf16.msra.mxu0 %v522_v7  ;;  %v550_v36 = vld [vmem:[#allocation7 + $0x70] sm:$0xff]   ;;  %v552_v38 = vld [vmem:[#allocation7 + $0x78] sm:$0xff]  }
  0x43   :  { %188 = vmatprep.subr.bf16.mxu0 %v523_v8  ;;  %v551_v37 = vld [vmem:[#allocation7 + $0x30] sm:$0xff]   ;;  %v553_v39 = vld [vmem:[#allocation7 + $0x38] sm:$0xff]   ;;  %p631_p13 = por %p630_p12, %p629_p11 }
  0x44   :  { %484 = vmatpush3.bf16.msra.mxu1 %v541_v22  ;;  %v90_v43 = vld [vmem:[%s834_s2] sm:$0x3] }
  0x45   :  { %485 = vmatprep.subr.bf16.mxu1 %v542_v23  ;;  %v95_v45 = vrot.slane %v90_v43, %v94_v42  ;;  %v99_v46 = vrot.slane %v90_v43, %v98_v44  ;;  %p632_p0 = pnand %p631_p13, %p625_p10 }
  0x46   :  { %189 = vmatpush1.bf16.msra.mxu0 %v525_v9 }
  0x47   :  { %190 = vmatprep.subr.bf16.mxu0 %v526_v10 }
  0x48   :  { %486 = vmatpush3.bf16.msra.mxu1 %v543_v24 }
  0x49   :  { %487 = vmatprep.subr.bf16.mxu1 %v544_v25 }
  0x4a   :  { %191 = vmatpush1.bf16.msra.mxu0 %v528_v11 }
  0x4b   :  { %192 = vmatprep.subr.bf16.mxu0 %v529_v12 }
  0x4c   :  { %488 = vmatpush3.bf16.msra.mxu1 %v545_v26 }
  0x4d   :  { %489 = vmatprep.subr.bf16.mxu1 %v546_v27 }
  0x4e   :  { %193 = vmatpush1.bf16.msra.mxu0 %v531_v13 }
  0x4f   :  { %194 = vmatprep.subr.bf16.mxu0 %v532_v14 }
  0x50   :  { %490 = vmatpush3.bf16.msra.mxu1 %v547_v28 }
  0x51   :  { %491 = vmatprep.subr.bf16.mxu1 %v548_v29 }
  0x52   :  { %195 = vmatpush1.bf16.msra.mxu0 %v534_v16 }
  0x53   :  { %196 = vmatprep.subr.bf16.mxu0 %v535_v17 }
  0x54   :  { %492 = vmatpush3.bf16.msra.mxu1 %v549_v30 }
  0x55   :  { %493 = vmatprep.subr.bf16.mxu1 %v550_v36 }
  0x56   :  { %197 = vmatpush1.bf16.msra.mxu0 %v537_v18 }
  0x58   :  { %494 = vmatpush3.bf16.msra.mxu1 %v551_v37 }
  0x59   :  { %495 = vmatprep.subr.bf16.mxu1 %v552_v38 }
  0x5c   :  { %496 = vmatpush3.bf16.msra.mxu1 %v553_v39 }
  0xc8   :  { %v68_v31 = vpop.xlane.xlu0 %67 }
  0xc9   :  { %v69_v32 = vmax.f32 %v68_v31, 1e-24 }
  0xcb   :  { %554 = vrsqrt.f32 %v69_v32 }
  0xd5   :  { %v555_v33 = vpop.eup %554 }
  0xd6   :  { %v71_v34 = vmul.f32 %v555_v33, %v785_v0 }
  0xd8   :  { %v73_v35 = vpack.c.bf16 %v71_v34, %v71_v34  ;;  %72 = vst [vmem:[#allocation8] sm:$0xff] %v71_v34 }
  0xda   :  { %215 = vmatmul.mubr.bf16.vlgmr.msra.gmra.mrb[0].mxu0 %v73_v35 }
 0x1ad   :  { %v216_v47 = vpop.f32.mrb[0].mxu0 }
 0x1ae   :  { %v217_v48 = vadd.f32 %v216_v47, %v95_v45  ;;  %v218_v49 = vpop.f32.mrb[1].mxu0 }
 0x1af   :  { %v219_v50 = vadd.f32 %v218_v49, %v99_v46  ;;  %v220_v51 = vpop.f32.mrb[2].mxu0 }
 0x1b0   :  { %v223_v52 = vmax.f32 %v217_v48, 0.0  ;;  %v221_v53 = vpop.f32.mrb[3].mxu0 }
 0x1b1   :  { %v224_v54 = vmax.f32 %v219_v50, 0.0 }
 0x1b2   :  { %v225_v56 = vpack.c.bf16 %v223_v52, %v223_v52 }
 0x1b3   :  { %v226_v55 = vpack.c.bf16 %v224_v54, %v224_v54 }
 0x1b5   :  { %394 = vmatprep.mubr.bf16.mxu1 %v226_v55 }
 0x1b6   :  { %395 = vmatmul.mubr.bf16.vlgmr.msra.gmra.mrb[0].mxu1 %v225_v56 }
 0x1b7   :  { %635 = shalt.err (!%p632_p0)
}
 0x1b8   :  { %s636_s21 = scalar_lea.hbm %s837_s5, 128 }
 0x1b9   :  { %p637_p1 = scmp.ne.s32.totalorder %s837_s5, %s636_s21  ;;  %p640_p2 = scmp.lt.u32.totalorder %s636_s21, %s837_s5 }
 0x1bb   :  { %p642_p3 = pnand %p640_p2, %p637_p1 }
 0x1bd   :  { %645 = shalt.err (!%p642_p3)
}
 0x1be   :  { %414 = dma.vmem_to_hbm [thread:$0]  %s412_s18, 128, %s837_s5, [#allocation4]   ;;  %v464_v58 = vld [vmem:[%s836_s4] ss:$0 sm:$0xff] }
 0x1bf   :  { %s707_s29 = smov [#allocation9]  }
 0x1c0   :  { %s421_s30 = sshll.u32 %s707_s29, 4  ;;  %s422_s30 = int_to_ptr.vmem [resolvable:$true] %s421_s30 }
 0x1c1   :  { %s646_s8 = scalar_lea.vmem %s422_s30, 128  ;;  %p651_p5 = scmp.lt.s32.totalorder %s422_s30, %s422_s30 }
 0x1c2   :  { %p647_p4 = scmp.ne.s32.totalorder %s422_s30, %s646_s8  ;;  %p652_p6 = scmp.lt.s32.totalorder %s646_s8, %s646_s8 }
 0x1c4   :  { %p653_p7 = por %p652_p6, %p651_p5 }
 0x1c6   :  { %p654_p8 = pnand %p653_p7, %p647_p4 }
 0x289   :  { %v497_v57 = vpop.f32.mrb[0].mxu1 }
 0x28a   :  { %v498_v59 = vpop.f32.mrb[1].mxu1 }
 0x28b   :  { %v499_v60 = vadd.f32 %v498_v59, %v497_v57  ;;  %v500_v61 = vpop.f32.mrb[2].mxu1 }
 0x28c   :  { %v501_v62 = vpop.f32.mrb[3].mxu1 }
 0x28d   :  { %v397_v63 = vadd.f32 %v499_v60, %v464_v58 }
 0x28f   :  { %556 = vtanh.f32 %v397_v63  ;;  %402 = vst [vmem:[#allocation9] sm:$0xff] %v397_v63 }
 0x290   :  { %657 = shalt.err (!%p654_p8)
}
 0x291   :  { %s658_s4 = scalar_lea.hbm %s838_s6, 128 }
 0x292   :  { %p659_p9 = scmp.ne.s32.totalorder %s838_s6, %s658_s4  ;;  %p662_p10 = scmp.lt.u32.totalorder %s658_s4, %s838_s6 }
 0x294   :  { %p664_p11 = pnand %p662_p10, %p659_p9 }
 0x296   :  { %667 = shalt.err (!%p664_p11)
}
 0x297   :  { %424 = dma.vmem_to_hbm [thread:$0]  %s422_s30, 128, %s838_s6, [#allocation10]  }
 0x298   :  { %s708_s15 = smov [#allocation11]  }
 0x299   :  { %s431_s3 = sshll.u32 %s708_s15, 4  ;;  %v557_v0 = vpop.eup %556  ;;  %s432_s3 = int_to_ptr.vmem [resolvable:$true] %s431_s3 }
 0x29a   :  { %404 = vst [vmem:[#allocation11] sm:$0xff] %v557_v0  ;;  %s668_s16 = scalar_lea.vmem %s432_s3, 128  ;;  %p673_p13 = scmp.lt.s32.totalorder %s432_s3, %s432_s3 }
 0x29b   :  { %p669_p12 = scmp.ne.s32.totalorder %s432_s3, %s668_s16  ;;  %p674_p0 = scmp.lt.s32.totalorder %s668_s16, %s668_s16 }
 0x29d   :  { %p675_p1 = por %p674_p0, %p673_p13 }
 0x29f   :  { %p676_p2 = pnand %p675_p1, %p669_p12 }
 0x2a1   :  { %679 = shalt.err (!%p676_p2)
}
 0x2a2   :  { %s680_s19 = scalar_lea.hbm %s839_s7, 128 }
 0x2a3   :  { %p681_p3 = scmp.ne.s32.totalorder %s839_s7, %s680_s19  ;;  %p684_p4 = scmp.lt.u32.totalorder %s680_s19, %s839_s7 }
 0x2a5   :  { %p686_p5 = pnand %p684_p4, %p681_p3 }
 0x2a7   :  { %689 = shalt.err (!%p686_p5)
}
 0x2a8   :  { %434 = dma.vmem_to_hbm [thread:$0]  %s432_s3, 128, %s839_s7, [#allocation10]  }
 0x2a9   :  { %694 = dma.done.wait [#allocation4], 128  }
 0x2aa   :  { %695 = vsyncadd [#allocation4], 4294967168 }
 0x2ab   :  { %696 = dma.done.wait [#allocation10], 256  }
 0x2ac   :  { %697 = vsyncadd [#allocation10], 4294967040 }
 0x2ad   :  { %444 = vsyncpa [#allocation3], 1 }
 0x2ae   :  { %445 = vsyncpa [#allocation6], 1 }
 0x2af   :  { %446 = vsyncpa [#allocation4], 1 }
 0x2b0   :  { %447 = vsyncpa [#allocation10], 1 }

// kernel: tpu_custom_call.1
= control target key start
LH: loop header
LB: loop body
LE: loop exit
PB: predicated region body
PF: predicated region fallthrough
CT: control target
= control target key end

     0   :  { %13 = vsyncpa [#allocation3], 0  ;;  %s832_s0 = inlined_call_operand.hbm [shape: f32[8,128], index: 0, kind: input, shape index: {}]   ;;  %s833_s1 = inlined_call_operand.hbm [shape: bf16[128,256], index: 1, kind: input, shape index: {}]   ;;  %s834_s2 = inlined_call_operand.vmem [shape: f32[1,256], index: 2, kind: input, shape index: {}]   ;;  %s835_s3 = inlined_call_operand.hbm [shape: bf16[256,128], index: 3, kind: input, shape index: {}]   ;;  %s836_s4 = inlined_call_operand.vmem [shape: f32[1,128], index: 4, kind: input, shape index: {}]   ;;  %s837_s5 = inlined_call_operand.hbm [shape: f32[8,128], index: 5, kind: output, shape index: {0}]   ;;  %s838_s6 = inlined_call_operand.hbm [shape: f32[8,128], index: 6, kind: output, shape index: {1}]   ;;  %s839_s7 = inlined_call_operand.hbm [shape: f32[8,128], index: 7, kind: output, shape index: {2}]  }
   0x1   :  { %14 = vsyncpa [#allocation6], 0 }
   0x2   :  { %15 = vsyncpa [#allocation4], 0 }
   0x3   :  { %16 = vsyncpa [#allocation10], 0  ;;  %s698_s24 = smov [#allocation5]   ;;  %s558_s28 = scalar_lea.hbm %s833_s1, 2048 }
   0x4   :  { %s32_s25 = sshll.u32 %s698_s24, 4  ;;  %p559_p0 = scmp.ne.s32.totalorder %s833_s1, %s558_s28  ;;  %s33_s25 = int_to_ptr.vmem [resolvable:$true] %s32_s25 }
   0x5   :  { %p562_p1 = scmp.lt.u32.totalorder %s558_s28, %s833_s1 }
   0x7   :  { %p564_p2 = pnand %p562_p1, %p559_p0 }
   0x9   :  { %567 = shalt.err (!%p564_p2)
}
   0xa   :  { %s568_s10 = scalar_lea.vmem %s33_s25, 2048  ;;  %p573_p4 = scmp.lt.s32.totalorder %s33_s25, %s33_s25 }
   0xb   :  { %p569_p3 = scmp.ne.s32.totalorder %s33_s25, %s568_s10  ;;  %p574_p5 = scmp.lt.s32.totalorder %s568_s10, %s568_s10 }
   0xd   :  { %p575_p6 = por %p574_p5, %p573_p4 }
   0xf   :  { %p576_p7 = pnand %p575_p6, %p569_p3 }
  0x11   :  { %579 = shalt.err (!%p576_p7)
}
  0x12   :  { %s699_s11 = smov 128   ;;  %s700_s12 = smov 8  }
  0x13   :  { %38 = dma.hbm_to_vmem [thread:$0]  %s833_s1, 2048, %s33_s25, [#allocation6], %s699_s11, %s699_s11, %s700_s12  }
  0x14   :  { %s701_s15 = smov [#allocation2]   ;;  %s702_s17 = smov [#allocation7]  }
  0x15   :  { %s23_s16 = sshll.u32 %s701_s15, 4  ;;  %s46_s18 = sshll.u32 %s702_s17, 4  ;;  %s24_s16 = int_to_ptr.vmem [resolvable:$true] %s23_s16  ;;  %s47_s18 = int_to_ptr.vmem [resolvable:$true] %s46_s18 }
  0x16   :  { %s580_s21 = scalar_lea.hbm %s832_s0, 128 }
  0x17   :  { %p581_p8 = scmp.ne.s32.totalorder %s832_s0, %s580_s21  ;;  %p584_p9 = scmp.lt.u32.totalorder %s580_s21, %s832_s0 }
  0x19   :  { %p586_p10 = pnand %p584_p9, %p581_p8 }
  0x1b   :  { %589 = shalt.err (!%p586_p10)
}
  0x1c   :  { %s590_s1 = scalar_lea.vmem %s24_s16, 128  ;;  %p595_p12 = scmp.lt.s32.totalorder %s24_s16, %s24_s16 }
  0x1d   :  { %p591_p11 = scmp.ne.s32.totalorder %s24_s16, %s590_s1  ;;  %p596_p13 = scmp.lt.s32.totalorder %s590_s1, %s590_s1 }
  0x1f   :  { %p597_p0 = por %p596_p13, %p595_p12 }
  0x21   :  { %p598_p1 = pnand %p597_p0, %p591_p11 }
  0x23   :  { %601 = shalt.err (!%p598_p1)
}
  0x24   :  { %26 = dma.hbm_to_vmem [thread:$0]  %s832_s0, 128, %s24_s16, [#allocation3]  }
  0x25   :  { %s602_s30 = scalar_lea.hbm %s835_s3, 2048 }
  0x26   :  { %p603_p2 = scmp.ne.s32.totalorder %s835_s3, %s602_s30  ;;  %p606_p3 = scmp.lt.u32.totalorder %s602_s30, %s835_s3 }
  0x28   :  { %p608_p4 = pnand %p606_p3, %p603_p2 }
  0x2a   :  { %611 = shalt.err (!%p608_p4)
}
  0x2b   :  { %s612_s12 = scalar_lea.vmem %s47_s18, 2048  ;;  %p617_p6 = scmp.lt.s32.totalorder %s47_s18, %s47_s18 }
  0x2c   :  { %p613_p5 = scmp.ne.s32.totalorder %s47_s18, %s612_s12  ;;  %p618_p7 = scmp.lt.s32.totalorder %s612_s12, %s612_s12 }
  0x2e   :  { %p619_p8 = por %p618_p7, %p617_p6 }
  0x30   :  { %p620_p9 = pnand %p619_p8, %p613_p5 }
  0x32   :  { %623 = shalt.err (!%p620_p9)
}
  0x33   :  { %s703_s0 = smov 64   ;;  %s704_s13 = smov 4  }
  0x34   :  { %52 = dma.hbm_to_vmem [thread:$0]  %s835_s3, 2048, %s47_s18, [#allocation6], %s703_s0, %s703_s0, %s704_s13  }
  0x35   :  { %690 = dma.done.wait [#allocation3], 128  }
  0x36   :  { %691 = vsyncadd [#allocation3], 4294967168 }
  0x37   :  { %692 = dma.done.wait [#allocation6], 4096  }
  0x38   :  { %693 = vsyncadd [#allocation6], 4294963200  ;;  %v785_v0 = vld [vmem:[#allocation2] sm:$0xff]  ;;  %v514_v2 = vld [vmem:[#allocation5 + $0x4] ss:$8 sps:$4 sm:$0xff]   ;;  %v705_v15 = vmov 0   ;;  %v92_v40 = vlaneseq }
  0x39   :  { %v66_v1 = vmul.f32 %v785_v0, %v785_v0  ;;  %v516_v3 = vld [vmem:[#allocation5] ss:$8 sps:$4 sm:$0xff]   ;;  %v517_v4 = vld [vmem:[#allocation5 + $0x14] ss:$8 sps:$4 sm:$0xff]   ;;  %182 = vmatprep.subr.bf16.mxu0 %v514_v2  ;;  %v519_v5 = vld [vmem:[#allocation5 + $0x10] ss:$8 sps:$4 sm:$0xff]   ;;  %214 = vmatprep.mubr.bf16.mxu0 %v705_v15 }
  0x3a   :  { %183 = vmatpush1.bf16.msra.mxu0 %v516_v3  ;;  %v520_v6 = vld [vmem:[#allocation5 + $0x24] ss:$8 sps:$4 sm:$0xff]   ;;  %v522_v7 = vld [vmem:[#allocation5 + $0x20] ss:$8 sps:$4 sm:$0xff]   ;;  %v523_v8 = vld [vmem:[#allocation5 + $0x34] ss:$8 sps:$4 sm:$0xff]  }
  0x3b   :  { %67 = vadd.xlane.f32.xlu0 %v66_v1  ;;  %184 = vmatprep.subr.bf16.mxu0 %v517_v4  ;;  %v525_v9 = vld [vmem:[#allocation5 + $0x30] ss:$8 sps:$4 sm:$0xff]   ;;  %v526_v10 = vld [vmem:[#allocation5 + $0x44] ss:$8 sps:$4 sm:$0xff]   ;;  %v528_v11 = vld [vmem:[#allocation5 + $0x40] ss:$8 sps:$4 sm:$0xff]  }
  0x3c   :  { %v529_v12 = vld [vmem:[#allocation5 + $0x54] ss:$8 sps:$4 sm:$0xff]   ;;  %v531_v13 = vld [vmem:[#allocation5 + $0x50] ss:$8 sps:$4 sm:$0xff]   ;;  %v532_v14 = vld [vmem:[#allocation5 + $0x64] ss:$8 sps:$4 sm:$0xff]  }
  0x3d   :  { %v534_v16 = vld [vmem:[#allocation5 + $0x60] ss:$8 sps:$4 sm:$0xff]   ;;  %v535_v17 = vld [vmem:[#allocation5 + $0x74] ss:$8 sps:$4 sm:$0xff]   ;;  %v537_v18 = vld [vmem:[#allocation5 + $0x70] ss:$8 sps:$4 sm:$0xff]  }
  0x3e   :  { %185 = vmatpush1.bf16.msra.mxu0 %v519_v5  ;;  %v538_v19 = vld [vmem:[#allocation7 + $0x40] sm:$0xff]   ;;  %v540_v21 = vld [vmem:[#allocation7 + $0x48] sm:$0xff]   ;;  %v542_v23 = vld [vmem:[#allocation7 + $0x50] sm:$0xff]   ;;  %v93_v41 = vshrl.u32 %v92_v40, 7  ;;  %s706_s17 = smov [#allocation8]  }
  0x3f   :  { %186 = vmatprep.subr.bf16.mxu0 %v520_v6  ;;  %v539_v20 = vld [vmem:[#allocation7] sm:$0xff]   ;;  %481 = vmatprep.subr.bf16.mxu1 %v538_v19  ;;  %v541_v22 = vld [vmem:[#allocation7 + $0x8] sm:$0xff]   ;;  %v543_v24 = vld [vmem:[#allocation7 + $0x10] sm:$0xff]   ;;  %s411_s18 = sshll.u32 %s706_s17, 4  ;;  %s412_s18 = int_to_ptr.vmem [resolvable:$true] %s411_s18 }
  0x40   :  { %482 = vmatpush3.bf16.msra.mxu1 %v539_v20  ;;  %v544_v25 = vld [vmem:[#allocation7 + $0x58] sm:$0xff]   ;;  %v546_v27 = vld [vmem:[#allocation7 + $0x60] sm:$0xff]   ;;  %v548_v29 = vld [vmem:[#allocation7 + $0x68] sm:$0xff]   ;;  %v94_v42 = vsub.s32 0, %v93_v41  ;;  %v98_v44 = vsub.s32 1, %v93_v41  ;;  %s624_s19 = scalar_lea.vmem %s412_s18, 128  ;;  %p629_p11 = scmp.lt.s32.totalorder %s412_s18, %s412_s18 }
  0x41   :  { %483 = vmatprep.subr.bf16.mxu1 %v540_v21  ;;  %v545_v26 = vld [vmem:[#allocation7 + $0x18] sm:$0xff]   ;;  %v547_v28 = vld [vmem:[#allocation7 + $0x20] sm:$0xff]   ;;  %v549_v30 = vld [vmem:[#allocation7 + $0x28] sm:$0xff]   ;;  %p625_p10 = scmp.ne.s32.totalorder %s412_s18, %s624_s19  ;;  %p630_p12 = scmp.lt.s32.totalorder %s624_s19, %s624_s19 }
  0x42   :  { %187 = vmatpush1.bf16.msra.mxu0 %v522_v7  ;;  %v550_v36 = vld [vmem:[#allocation7 + $0x70] sm:$0xff]   ;;  %v552_v38 = vld [vmem:[#allocation7 + $0x78] sm:$0xff]  }
  0x43   :  { %188 = vmatprep.subr.bf16.mxu0 %v523_v8  ;;  %v551_v37 = vld [vmem:[#allocation7 + $0x30] sm:$0xff]   ;;  %v553_v39 = vld [vmem:[#allocation7 + $0x38] sm:$0xff]   ;;  %p631_p13 = por %p630_p12, %p629_p11 }
  0x44   :  { %484 = vmatpush3.bf16.msra.mxu1 %v541_v22  ;;  %v90_v43 = vld [vmem:[%s834_s2] sm:$0x3] }
  0x45   :  { %485 = vmatprep.subr.bf16.mxu1 %v542_v23  ;;  %v95_v45 = vrot.slane %v90_v43, %v94_v42  ;;  %v99_v46 = vrot.slane %v90_v43, %v98_v44  ;;  %p632_p0 = pnand %p631_p13, %p625_p10 }
  0x46   :  { %189 = vmatpush1.bf16.msra.mxu0 %v525_v9 }
  0x47   :  { %190 = vmatprep.subr.bf16.mxu0 %v526_v10 }
  0x48   :  { %486 = vmatpush3.bf16.msra.mxu1 %v543_v24 }
  0x49   :  { %487 = vmatprep.subr.bf16.mxu1 %v544_v25 }
  0x4a   :  { %191 = vmatpush1.bf16.msra.mxu0 %v528_v11 }
  0x4b   :  { %192 = vmatprep.subr.bf16.mxu0 %v529_v12 }
  0x4c   :  { %488 = vmatpush3.bf16.msra.mxu1 %v545_v26 }
  0x4d   :  { %489 = vmatprep.subr.bf16.mxu1 %v546_v27 }
  0x4e   :  { %193 = vmatpush1.bf16.msra.mxu0 %v531_v13 }
  0x4f   :  { %194 = vmatprep.subr.bf16.mxu0 %v532_v14 }
  0x50   :  { %490 = vmatpush3.bf16.msra.mxu1 %v547_v28 }
  0x51   :  { %491 = vmatprep.subr.bf16.mxu1 %v548_v29 }
  0x52   :  { %195 = vmatpush1.bf16.msra.mxu0 %v534_v16 }
  0x53   :  { %196 = vmatprep.subr.bf16.mxu0 %v535_v17 }
  0x54   :  { %492 = vmatpush3.bf16.msra.mxu1 %v549_v30 }
  0x55   :  { %493 = vmatprep.subr.bf16.mxu1 %v550_v36 }
  0x56   :  { %197 = vmatpush1.bf16.msra.mxu0 %v537_v18 }
  0x58   :  { %494 = vmatpush3.bf16.msra.mxu1 %v551_v37 }
  0x59   :  { %495 = vmatprep.subr.bf16.mxu1 %v552_v38 }
  0x5c   :  { %496 = vmatpush3.bf16.msra.mxu1 %v553_v39 }
  0xc8   :  { %v68_v31 = vpop.xlane.xlu0 %67 }
  0xc9   :  { %v69_v32 = vmax.f32 %v68_v31, 1e-24 }
  0xcb   :  { %554 = vrsqrt.f32 %v69_v32 }
  0xd5   :  { %v555_v33 = vpop.eup %554 }
  0xd6   :  { %v71_v34 = vmul.f32 %v555_v33, %v785_v0 }
  0xd8   :  { %v73_v35 = vpack.c.bf16 %v71_v34, %v71_v34  ;;  %72 = vst [vmem:[#allocation8] sm:$0xff] %v71_v34 }
  0xda   :  { %215 = vmatmul.mubr.bf16.vlgmr.msra.gmra.mrb[0].mxu0 %v73_v35 }
 0x1ad   :  { %v216_v47 = vpop.f32.mrb[0].mxu0 }
 0x1ae   :  { %v217_v48 = vadd.f32 %v216_v47, %v95_v45  ;;  %v218_v49 = vpop.f32.mrb[1].mxu0 }
 0x1af   :  { %v219_v50 = vadd.f32 %v218_v49, %v99_v46  ;;  %v220_v51 = vpop.f32.mrb[2].mxu0 }
 0x1b0   :  { %v223_v52 = vmax.f32 %v217_v48, 0.0  ;;  %v221_v53 = vpop.f32.mrb[3].mxu0 }
 0x1b1   :  { %v224_v54 = vmax.f32 %v219_v50, 0.0 }
 0x1b2   :  { %v225_v56 = vpack.c.bf16 %v223_v52, %v223_v52 }
 0x1b3   :  { %v226_v55 = vpack.c.bf16 %v224_v54, %v224_v54 }
 0x1b5   :  { %394 = vmatprep.mubr.bf16.mxu1 %v226_v55 }
 0x1b6   :  { %395 = vmatmul.mubr.bf16.vlgmr.msra.gmra.mrb[0].mxu1 %v225_v56 }
 0x1b7   :  { %635 = shalt.err (!%p632_p0)
}
 0x1b8   :  { %s636_s21 = scalar_lea.hbm %s837_s5, 128 }
 0x1b9   :  { %p637_p1 = scmp.ne.s32.totalorder %s837_s5, %s636_s21  ;;  %p640_p2 = scmp.lt.u32.totalorder %s636_s21, %s837_s5 }
 0x1bb   :  { %p642_p3 = pnand %p640_p2, %p637_p1 }
 0x1bd   :  { %645 = shalt.err (!%p642_p3)
}
 0x1be   :  { %414 = dma.vmem_to_hbm [thread:$0]  %s412_s18, 128, %s837_s5, [#allocation4]   ;;  %v464_v58 = vld [vmem:[%s836_s4] ss:$0 sm:$0xff] }
 0x1bf   :  { %s707_s29 = smov [#allocation9]  }
 0x1c0   :  { %s421_s30 = sshll.u32 %s707_s29, 4  ;;  %s422_s30 = int_to_ptr.vmem [resolvable:$true] %s421_s30 }
 0x1c1   :  { %s646_s8 = scalar_lea.vmem %s422_s30, 128  ;;  %p651_p5 = scmp.lt.s32.totalorder %s422_s30, %s422_s30 }
 0x1c2   :  { %p647_p4 = scmp.ne.s32.totalorder %s422_s30, %s646_s8  ;;  %p652_p6 = scmp.lt.s32.totalorder %s646_s8, %s646_s8 }
 0x1c4   :  { %p653_p7 = por %p652_p6, %p651_p5 }
 0x1c6   :  { %p654_p8 = pnand %p653_p7, %p647_p4 }
 0x289   :  { %v497_v57 = vpop.f32.mrb[0].mxu1 }
 0x28a   :  { %v498_v59 = vpop.f32.mrb[1].mxu1 }
 0x28b   :  { %v499_v60 = vadd.f32 %v498_v59, %v497_v57  ;;  %v500_v61 = vpop.f32.mrb[2].mxu1 }
 0x28c   :  { %v501_v62 = vpop.f32.mrb[3].mxu1 }
 0x28d   :  { %v397_v63 = vadd.f32 %v499_v60, %v464_v58 }
 0x28f   :  { %556 = vtanh.f32 %v397_v63  ;;  %402 = vst [vmem:[#allocation9] sm:$0xff] %v397_v63 }
 0x290   :  { %657 = shalt.err (!%p654_p8)
}
 0x291   :  { %s658_s4 = scalar_lea.hbm %s838_s6, 128 }
 0x292   :  { %p659_p9 = scmp.ne.s32.totalorder %s838_s6, %s658_s4  ;;  %p662_p10 = scmp.lt.u32.totalorder %s658_s4, %s838_s6 }
 0x294   :  { %p664_p11 = pnand %p662_p10, %p659_p9 }
 0x296   :  { %667 = shalt.err (!%p664_p11)
}
 0x297   :  { %424 = dma.vmem_to_hbm [thread:$0]  %s422_s30, 128, %s838_s6, [#allocation10]  }
 0x298   :  { %s708_s15 = smov [#allocation11]  }
 0x299   :  { %s431_s3 = sshll.u32 %s708_s15, 4  ;;  %v557_v0 = vpop.eup %556  ;;  %s432_s3 = int_to_ptr.vmem [resolvable:$true] %s431_s3 }
 0x29a   :  { %404 = vst [vmem:[#allocation11] sm:$0xff] %v557_v0  ;;  %s668_s16 = scalar_lea.vmem %s432_s3, 128  ;;  %p673_p13 = scmp.lt.s32.totalorder %s432_s3, %s432_s3 }
 0x29b   :  { %p669_p12 = scmp.ne.s32.totalorder %s432_s3, %s668_s16  ;;  %p674_p0 = scmp.lt.s32.totalorder %s668_s16, %s668_s16 }
 0x29d   :  { %p675_p1 = por %p674_p0, %p673_p13 }
 0x29f   :  { %p676_p2 = pnand %p675_p1, %p669_p12 }
 0x2a1   :  { %679 = shalt.err (!%p676_p2)
}
 0x2a2   :  { %s680_s19 = scalar_lea.hbm %s839_s7, 128 }
 0x2a3   :  { %p681_p3 = scmp.ne.s32.totalorder %s839_s7, %s680_s19  ;;  %p684_p4 = scmp.lt.u32.totalorder %s680_s19, %s839_s7 }
 0x2a5   :  { %p686_p5 = pnand %p684_p4, %p681_p3 }
 0x2a7   :  { %689 = shalt.err (!%p686_p5)
}
 0x2a8   :  { %434 = dma.vmem_to_hbm [thread:$0]  %s432_s3, 128, %s839_s7, [#allocation10]  }
 0x2a9   :  { %694 = dma.done.wait [#allocation4], 128  }
 0x2aa   :  { %695 = vsyncadd [#allocation4], 4294967168 }
 0x2ab   :  { %696 = dma.done.wait [#allocation10], 256  }
 0x2ac   :  { %697 = vsyncadd [#allocation10], 4294967040 }
 0x2ad   :  { %444 = vsyncpa [#allocation3], 1 }
 0x2ae   :  { %445 = vsyncpa [#allocation6], 1 }
 0x2af   :  { %446 = vsyncpa [#allocation4], 1 }
 0x2b0   :  { %447 = vsyncpa [#allocation10], 1 }

</bundles_post_ra>
